<compile_context>
chip_gen: v7x
topology: tpu7x:2x2x1
jax: 0.10.0
libtpu: 0.0.40
codegen_flags: <defaults>
</compile_context>

<pallas_src>
import functools

import jax
import jax.numpy as jnp
from jax.experimental import pallas as pl
from jax.experimental.pallas import tpu as pltpu

IGNORE_INDEX = -100


def _round_up(x, m):
    return ((x + m - 1) // m) * m


def _ce_kernel(labels_ref, logits_ref, loss_ref, m_sc, l_sc, p_sc, *, vocab_size):
    """Online logsumexp over vocab chunks + one-hot gather of the label logit.

    Grid: (row_tiles, vocab_chunks). Scratch (per row tile):
      m_sc: running max, l_sc: running sum-of-exp, p_sc: picked label logit.
    Per-row masked loss is written on the last vocab chunk.
    """
    k = pl.program_id(1)
    nk = pl.num_programs(1)

    @pl.when(k == 0)
    def _():
        m_sc[...] = jnp.full_like(m_sc, -jnp.inf)
        l_sc[...] = jnp.zeros_like(l_sc)
        p_sc[...] = jnp.zeros_like(p_sc)

    logits = logits_ref[...].astype(jnp.float32)          # (TM, VC)
    labels = labels_ref[...]                              # (TM, 1) int32

    vc = logits.shape[1]
    # Global vocab ids for this chunk; mask columns past the real vocab size
    # (ragged last chunk reads undefined data).
    col = jax.lax.broadcasted_iota(jnp.int32, logits.shape, 1) + k * vc
    col_valid = col < vocab_size
    neg_inf = jnp.float32(-jnp.inf)
    logits_m = jnp.where(col_valid, logits, neg_inf)

    # Online (streaming) logsumexp update.
    m_prev = m_sc[...]                                    # (TM, 1)
    m_curr = jnp.maximum(m_prev, jnp.max(logits_m, axis=-1, keepdims=True))
    alpha = jnp.exp(m_prev - m_curr)
    l_sc[...] = alpha * l_sc[...] + jnp.sum(
        jnp.exp(logits_m - m_curr), axis=-1, keepdims=True
    )
    m_sc[...] = m_curr

    # Gather logits[row, label[row]] via compare-and-sum within this chunk.
    # IGNORE_INDEX (-100) and out-of-range padded columns never match.
    p_sc[...] += jnp.sum(jnp.where(col == labels, logits, 0.0),
                         axis=-1, keepdims=True)

    @pl.when(k == nk - 1)
    def _():
        valid = labels != IGNORE_INDEX
        lse = m_sc[...] + jnp.log(l_sc[...])
        loss_ref[...] = jnp.where(valid, lse - p_sc[...], 0.0)


@functools.partial(jax.jit, static_argnames=("tile_rows", "vocab_chunk"))
def cross_entropy_for_lm(prediction, target, tile_rows=256, vocab_chunk=2048):
    """prediction: (B, S, V) float; target: (B, S) int. Returns scalar mean loss."""
    B, S, V = prediction.shape
    total_rows = B * S

    # Free reshape (row-major, no copy): all (B*S) rows go through the kernel;
    # the shift is expressed purely via the labels.
    logits2d = prediction.reshape(total_rows, V)

    # Label for logits row (b*S + s) is target[b, s+1]; the last sequence
    # position of each batch is ignored. This is a tiny int32 array.
    labels = jnp.full((B, S), IGNORE_INDEX, dtype=jnp.int32)
    labels = labels.at[:, :-1].set(target[:, 1:].astype(jnp.int32))
    labels = labels.reshape(total_rows)

    # Row tile: large (roofline-sized) but no bigger than the (8-aligned)
    # problem. Pad only the tiny labels array; ragged logits rows are masked.
    tm = min(tile_rows, _round_up(total_rows, 8))
    np_rows = _round_up(total_rows, tm)
    labels = jnp.pad(labels, (0, np_rows - total_rows),
                     constant_values=IGNORE_INDEX).reshape(np_rows, 1)

    # Vocab chunk: full V for small vocabs, otherwise a 128-multiple chunk.
    vc = V if V <= vocab_chunk else vocab_chunk
    kv = pl.cdiv(V, vc)
    r = np_rows // tm

    kernel = functools.partial(_ce_kernel, vocab_size=V)

    per_row_loss = pl.pallas_call(
        kernel,
        out_shape=jax.ShapeDtypeStruct((np_rows, 1), jnp.float32),
        grid_spec=pltpu.PrefetchScalarGridSpec(
            num_scalar_prefetch=0,
            grid=(r, kv),                                  # reduction axis last
            in_specs=[
                pl.BlockSpec((tm, 1), lambda i, k: (i, 0)),    # labels
                pl.BlockSpec((tm, vc), lambda i, k: (i, k)),   # logits
            ],
            out_specs=pl.BlockSpec((tm, 1), lambda i, k: (i, 0)),
            scratch_shapes=[
                pltpu.VMEM((tm, 1), jnp.float32),   # running max
                pltpu.VMEM((tm, 1), jnp.float32),   # running sum of exp
                pltpu.VMEM((tm, 1), jnp.float32),   # picked label logit
            ],
        ),
        compiler_params=pltpu.CompilerParams(
            dimension_semantics=("parallel", "arbitrary"),
            vmem_limit_bytes=32 * 1024 * 1024,
        ),
    )(labels, logits2d)

    # Tiny final reduction + divide outside the kernel (keeps row axis parallel).
    valid_count = jnp.sum((target[:, 1:] != IGNORE_INDEX).astype(jnp.float32))
    return jnp.sum(per_row_loss) / valid_count


def _reference(prediction, target):
    """Pure-JAX reference matching nn.CrossEntropyLoss semantics."""
    V = prediction.shape[-1]
    logits = prediction[:, :-1, :].reshape(-1, V).astype(jnp.float32)
    labels = target[:, 1:].reshape(-1)
    lse = jax.scipy.special.logsumexp(logits, axis=-1)
    picked = jnp.take_along_axis(logits, labels[:, None], axis=-1)[:, 0]
    valid = labels != IGNORE_INDEX
    losses = jnp.where(valid, lse - picked, 0.0)
    return jnp.sum(losses) / jnp.sum(valid.astype(jnp.float32))


if __name__ == "__main__":
    key = jax.random.PRNGKey(0)
    k1, k2, k3, k4 = jax.random.split(key, 4)

    # --- main small example (single vocab chunk, exact row tile) ---
    B, S, V = 2, 8, 32
    prediction = jax.random.normal(k1, (B, S, V), dtype=jnp.float32)
    target = jax.random.randint(k2, (B, S), 0, V, dtype=jnp.int32)

    loss = cross_entropy_for_lm(prediction, target)
    loss = jax.block_until_ready(loss)
    ref = _reference(prediction, target)
    assert jnp.allclose(loss, ref, atol=1e-4, rtol=1e-5), (loss, ref)

    # --- second check: exercises online logsumexp across vocab chunks,
    #     ragged vocab tail and ragged row tail masking ---
    B2, S2, V2 = 2, 9, 320
    pred2 = jax.random.normal(k3, (B2, S2, V2), dtype=jnp.float32)
    tgt2 = jax.random.randint(k4, (B2, S2), 0, V2, dtype=jnp.int32)

    loss2 = cross_entropy_for_lm(pred2, tgt2, vocab_chunk=128)
    loss2 = jax.block_until_ready(loss2)
    ref2 = _reference(pred2, tgt2)
    assert jnp.allclose(loss2, ref2, atol=1e-4, rtol=1e-5), (loss2, ref2)

    print("KERNEL_OK")
</pallas_src>

<mosaic_0001>
module attributes {stable_mosaic.version = 11 : i64} {
  func.func @_ce_kernel(%arg0: i32, %arg1: i32, %arg2: memref<16x1xi32, #tpu.memory_space<vmem>>, %arg3: memref<16x32xf32, #tpu.memory_space<vmem>>, %arg4: memref<16x1xf32, #tpu.memory_space<vmem>>, %arg5: memref<16x1xf32, #tpu.memory_space<vmem>>, %arg6: memref<16x1xf32, #tpu.memory_space<vmem>>, %arg7: memref<16x1xf32, #tpu.memory_space<vmem>>) attributes {dimension_semantics = [#tpu.dimension_semantics<parallel>, #tpu.dimension_semantics<arbitrary>], iteration_bounds = array<i64: 1, 1>, scalar_prefetch = 0 : i64, scratch_operands = 3 : i64, tpu.core_type = #tpu.core_type<tc>, window_params = [{transform_indices = @transform_0, window_bounds = array<i64: 16, 1>}, {transform_indices = @transform_1, window_bounds = array<i64: 16, 32>}, {transform_indices = @transform_2, window_bounds = array<i64: 16, 1>}]} {
    %c0_i32 = arith.constant 0 : i32
    %0 = arith.cmpi eq, %arg1, %c0_i32 : i32
    %1 = arith.extui %0 : i1 to i32
    %c0_i32_0 = arith.constant 0 : i32
    %2 = arith.cmpi ne, %1, %c0_i32_0 : i32
    scf.if %2 {
      %cst_23 = arith.constant 0xFF800000 : f32
      %41 = vector.broadcast %cst_23 : f32 to vector<16x1xf32>
      %c0_24 = arith.constant 0 : index
      %c0_25 = arith.constant 0 : index
      %42 = vector.load %arg5[%c0_24, %c0_25] : memref<16x1xf32, #tpu.memory_space<vmem>>, vector<16x1xf32>
      tpu.vector_store %arg5[%c0_24, %c0_25], %41 {strides = array<i32>} : memref<16x1xf32, #tpu.memory_space<vmem>>, vector<16x1xf32>,
      %cst_26 = arith.constant 0.000000e+00 : f32
      %43 = vector.broadcast %cst_26 : f32 to vector<16x1xf32>
      %c0_27 = arith.constant 0 : index
      %c0_28 = arith.constant 0 : index
      %44 = vector.load %arg6[%c0_27, %c0_28] : memref<16x1xf32, #tpu.memory_space<vmem>>, vector<16x1xf32>
      tpu.vector_store %arg6[%c0_27, %c0_28], %43 {strides = array<i32>} : memref<16x1xf32, #tpu.memory_space<vmem>>, vector<16x1xf32>,
      %cst_29 = arith.constant 0.000000e+00 : f32
      %45 = vector.broadcast %cst_29 : f32 to vector<16x1xf32>
      %c0_30 = arith.constant 0 : index
      %c0_31 = arith.constant 0 : index
      %46 = vector.load %arg7[%c0_30, %c0_31] : memref<16x1xf32, #tpu.memory_space<vmem>>, vector<16x1xf32>
      tpu.vector_store %arg7[%c0_30, %c0_31], %45 {strides = array<i32>} : memref<16x1xf32, #tpu.memory_space<vmem>>, vector<16x1xf32>,
    } else {
    }
    %c0 = arith.constant 0 : index
    %c0_1 = arith.constant 0 : index
    %3 = vector.load %arg3[%c0, %c0_1] : memref<16x32xf32, #tpu.memory_space<vmem>>, vector<16x32xf32>
    %c0_2 = arith.constant 0 : index
    %c0_3 = arith.constant 0 : index
    %4 = vector.load %arg2[%c0_2, %c0_3] : memref<16x1xi32, #tpu.memory_space<vmem>>, vector<16x1xi32>
    %5 = tpu.iota {dimensions = array<i32: 1>} : vector<16x32xi32>
    %c32_i32 = arith.constant 32 : i32
    %6 = arith.muli %arg1, %c32_i32 : i32
    %7 = vector.broadcast %6 : i32 to vector<16x32xi32>
    %8 = arith.addi %5, %7 : vector<16x32xi32>
    %c32_i32_4 = arith.constant 32 : i32
    %9 = vector.broadcast %c32_i32_4 : i32 to vector<16x32xi32>
    %10 = arith.cmpi slt, %8, %9 : vector<16x32xi32>
    %cst = arith.constant 0xFF800000 : f32
    %11 = vector.broadcast %cst : f32 to vector<16x32xf32>
    %12 = arith.select %10, %3, %11 : vector<16x32xi1>, vector<16x32xf32>
    %c0_5 = arith.constant 0 : index
    %c0_6 = arith.constant 0 : index
    %13 = vector.load %arg5[%c0_5, %c0_6] : memref<16x1xf32, #tpu.memory_space<vmem>>, vector<16x1xf32>
    %cst_7 = arith.constant dense<0xFF800000> : vector<16xf32>
    %14 = vector.multi_reduction <maximumf>, %12, %cst_7 [1] : vector<16x32xf32> to vector<16xf32>
    %15 = vector.shape_cast %14 : vector<16xf32> to vector<16x1xf32>
    %16 = arith.maximumf %13, %15 : vector<16x1xf32>
    %17 = arith.subf %13, %16 : vector<16x1xf32>
    %18 = math.exp %17 : vector<16x1xf32>
    %c0_8 = arith.constant 0 : index
    %c0_9 = arith.constant 0 : index
    %19 = vector.load %arg6[%c0_8, %c0_9] : memref<16x1xf32, #tpu.memory_space<vmem>>, vector<16x1xf32>
    %20 = arith.mulf %18, %19 : vector<16x1xf32>
    %21 = vector.broadcast %16 : vector<16x1xf32> to vector<16x32xf32>
    %22 = arith.subf %12, %21 : vector<16x32xf32>
    %23 = math.exp %22 : vector<16x32xf32>
    %cst_10 = arith.constant dense<0.000000e+00> : vector<16xf32>
    %24 = vector.multi_reduction <add>, %23, %cst_10 [1] : vector<16x32xf32> to vector<16xf32>
    %25 = vector.shape_cast %24 : vector<16xf32> to vector<16x1xf32>
    %26 = arith.addf %20, %25 : vector<16x1xf32>
    %c0_11 = arith.constant 0 : index
    %c0_12 = arith.constant 0 : index
    %27 = vector.load %arg6[%c0_11, %c0_12] : memref<16x1xf32, #tpu.memory_space<vmem>>, vector<16x1xf32>
    tpu.vector_store %arg6[%c0_11, %c0_12], %26 {strides = array<i32>} : memref<16x1xf32, #tpu.memory_space<vmem>>, vector<16x1xf32>,
    %c0_13 = arith.constant 0 : index
    %c0_14 = arith.constant 0 : index
    %28 = vector.load %arg5[%c0_13, %c0_14] : memref<16x1xf32, #tpu.memory_space<vmem>>, vector<16x1xf32>
    tpu.vector_store %arg5[%c0_13, %c0_14], %16 {strides = array<i32>} : memref<16x1xf32, #tpu.memory_space<vmem>>, vector<16x1xf32>,
    %c0_15 = arith.constant 0 : index
    %c0_16 = arith.constant 0 : index
    %29 = vector.load %arg7[%c0_15, %c0_16] : memref<16x1xf32, #tpu.memory_space<vmem>>, vector<16x1xf32>
    %30 = vector.broadcast %4 : vector<16x1xi32> to vector<16x32xi32>
    %31 = arith.cmpi eq, %8, %30 : vector<16x32xi32>
    %cst_17 = arith.constant 0.000000e+00 : f32
    %32 = vector.broadcast %cst_17 : f32 to vector<16x32xf32>
    %33 = arith.select %31, %3, %32 : vector<16x32xi1>, vector<16x32xf32>
    %cst_18 = arith.constant dense<0.000000e+00> : vector<16xf32>
    %34 = vector.multi_reduction <add>, %33, %cst_18 [1] : vector<16x32xf32> to vector<16xf32>
    %35 = vector.shape_cast %34 : vector<16xf32> to vector<16x1xf32>
    %36 = arith.addf %29, %35 : vector<16x1xf32>
    %c0_19 = arith.constant 0 : index
    %c0_20 = arith.constant 0 : index
    %37 = vector.load %arg7[%c0_19, %c0_20] : memref<16x1xf32, #tpu.memory_space<vmem>>, vector<16x1xf32>
    tpu.vector_store %arg7[%c0_19, %c0_20], %36 {strides = array<i32>} : memref<16x1xf32, #tpu.memory_space<vmem>>, vector<16x1xf32>,
    %c0_i32_21 = arith.constant 0 : i32
    %38 = arith.cmpi eq, %arg1, %c0_i32_21 : i32
    %39 = arith.extui %38 : i1 to i32
    %c0_i32_22 = arith.constant 0 : i32
    %40 = arith.cmpi ne, %39, %c0_i32_22 : i32
    scf.if %40 {
      %c-100_i32 = arith.constant -100 : i32
      %41 = vector.broadcast %c-100_i32 : i32 to vector<16x1xi32>
      %42 = arith.cmpi ne, %4, %41 : vector<16x1xi32>
      %c0_23 = arith.constant 0 : index
      %c0_24 = arith.constant 0 : index
      %43 = vector.load %arg5[%c0_23, %c0_24] : memref<16x1xf32, #tpu.memory_space<vmem>>, vector<16x1xf32>
      %c0_25 = arith.constant 0 : index
      %c0_26 = arith.constant 0 : index
      %44 = vector.load %arg6[%c0_25, %c0_26] : memref<16x1xf32, #tpu.memory_space<vmem>>, vector<16x1xf32>
      %45 = math.log %44 : vector<16x1xf32>
      %46 = arith.addf %43, %45 : vector<16x1xf32>
      %c0_27 = arith.constant 0 : index
      %c0_28 = arith.constant 0 : index
      %47 = vector.load %arg7[%c0_27, %c0_28] : memref<16x1xf32, #tpu.memory_space<vmem>>, vector<16x1xf32>
      %48 = arith.subf %46, %47 : vector<16x1xf32>
      %cst_29 = arith.constant 0.000000e+00 : f32
      %49 = vector.broadcast %cst_29 : f32 to vector<16x1xf32>
      %50 = arith.select %42, %48, %49 : vector<16x1xi1>, vector<16x1xf32>
      %c0_30 = arith.constant 0 : index
      %c0_31 = arith.constant 0 : index
      %51 = vector.load %arg4[%c0_30, %c0_31] : memref<16x1xf32, #tpu.memory_space<vmem>>, vector<16x1xf32>
      tpu.vector_store %arg4[%c0_30, %c0_31], %50 {strides = array<i32>} : memref<16x1xf32, #tpu.memory_space<vmem>>, vector<16x1xf32>,
    } else {
    }
    return
  }
  func.func @transform_0(%arg0: i32, %arg1: i32) -> (i32, i32) {
    %c0_i32 = arith.constant 0 : i32
    %c0_i32_0 = arith.constant 0 : i32
    return %arg0, %c0_i32 : i32, i32
  }
  func.func @transform_1(%arg0: i32, %arg1: i32) -> (i32, i32) {
    %c0_i32 = arith.constant 0 : i32
    return %arg0, %arg1 : i32, i32
  }
  func.func @transform_2(%arg0: i32, %arg1: i32) -> (i32, i32) {
    %c0_i32 = arith.constant 0 : i32
    %c0_i32_0 = arith.constant 0 : i32
    return %arg0, %c0_i32 : i32, i32
  }
}

</mosaic_0001>

<bundles_post_ra>
// kernel: cross_entropy_for_lm.1
= control target key start
LH: loop header
LB: loop body
LE: loop exit
PB: predicated region body
PF: predicated region fallthrough
CT: control target
= control target key end

     0   :  { %v26_v0 = vlaneseq  ;;  %vm15_vm0 = vcmask 7168   ;;  %v150_v1 = vmov -inf   ;;  %vm36_vm1 = vcmask 261120   ;;  %s214_s1 = inlined_call_operand.vmem [shape: f32[16,32], index: 1, kind: input, shape index: {}]   ;;  %s215_s0 = inlined_call_operand.vmem [shape: s32[16,1], index: 0, kind: input, shape index: {}]   ;;  %s216_s2 = inlined_call_operand.vmem [shape: f32[16,1], index: 2, kind: output, shape index: {}]  }
   0x1   :  { %16 = vst.msk [vmem:[#allocation2] sm:$0xff] %vm15_vm0, %v150_v1  ;;  %17 = vst.msk [vmem:[#allocation2 + $0x8] sm:$0xff] %vm15_vm0, %v150_v1  ;;  %v22_v2 = vld [vmem:[%s214_s1] sm:$0xff]  ;;  %v23_v4 = vld [vmem:[%s214_s1 + $0x8] sm:$0xff]  ;;  %v151_v9 = vmov 0   ;;  %v152_v10 = vmov 0.0  }
   0x2   :  { %v27_v3 = vand.u32 127, %v26_v0  ;;  %136 = vset.pattern.permute.xlu1 %v151_v9  ;;  %137 = vset.pattern.permute.xlu0 %v151_v9  ;;  %18 = vst.msk [vmem:[#allocation3] sm:$0xff] %vm15_vm0, %v152_v10  ;;  %19 = vst.msk [vmem:[#allocation3 + $0x8] sm:$0xff] %vm15_vm0, %v152_v10  ;;  %v185_v11 = vld [vmem:[%s215_s0] sm:$0xff]  ;;  %v193_v20 = vld [vmem:[%s215_s0 + $0x8] sm:$0xff] }
   0x3   :  { %20 = vst.msk [vmem:[#allocation4] sm:$0xff] %vm15_vm0, %v152_v10  ;;  %21 = vst.msk [vmem:[#allocation4 + $0x8] sm:$0xff] %vm15_vm0, %v152_v10  ;;  %vm109_vm5 = vcmp.ne.s32.totalorder %v185_v11, 4294967196  ;;  %vm110_vm6 = vcmp.ne.s32.totalorder %v193_v20, 4294967196 }
   0x4   :  { %vm31_vm2 = vcmp.lt.s32.totalorder %v27_v3, 32 }
   0x5   :  { %v32_v5 = vsel %vm31_vm2, %v22_v2, -inf  ;;  %v33_v6 = vsel %vm31_vm2, %v23_v4, -inf }
   0x6   :  { %v37_v7 = vsel %vm36_vm1, %v32_v5, -inf  ;;  %v40_v8 = vsel %vm36_vm1, %v33_v6, -inf }
   0x7   :  { %38 = vmax.xlane.f32.xlu0 %v37_v7 }
   0x8   :  { %v34_v12 = vld [vmem:[#allocation2] sm:$0xff]  ;;  %v35_v15 = vld [vmem:[#allocation2 + $0x8] sm:$0xff] }
   0x9   :  { %v51_v43 = vld [vmem:[#allocation3] sm:$0xff]  ;;  %v52_v47 = vld [vmem:[#allocation3 + $0x8] sm:$0xff] }
   0xa   :  { %v84_v37 = vld [vmem:[#allocation4] sm:$0xff]  ;;  %v85_v52 = vld [vmem:[#allocation4 + $0x8] sm:$0xff] }
   0xb   :  { %41 = vmax.xlane.f32.xlu0 %v40_v8 }
  0x21   :  { %87 = vperm.xlu0 %137, %v185_v11  }
  0x94   :  { %v39_v13 = vpop.xlane.xlu0 %38 }
  0x95   :  { %v43_v14 = vmax.f32 %v34_v12, %v39_v13 }
  0x97   :  { %v45_v16 = vsub.f32 %v34_v12, %v43_v14  ;;  %82 = vst.msk [vmem:[#allocation2] sm:$0xff] %vm15_vm0, %v43_v14  ;;  %57 = vperm.xlu1 %136, %v43_v14  }
  0x98   :  { %v42_v17 = vpop.xlane.xlu0 %41 }
  0x99   :  { %v44_v18 = vmax.f32 %v35_v15, %v42_v17  ;;  %v47_v40 = vmul.f32 1.442695, %v45_v16 }
  0x9b   :  { %v46_v19 = vsub.f32 %v35_v15, %v44_v18  ;;  %83 = vst.msk [vmem:[#allocation2 + $0x8] sm:$0xff] %vm15_vm0, %v44_v18  ;;  %62 = vperm.xlu1 %136, %v44_v18  }
  0x9d   :  { %v49_v41 = vmul.f32 1.442695, %v46_v19 }
  0x9e   :  { %v111_v59 = vld [vmem:[#allocation2] sm:$0xff] }
  0x9f   :  { %90 = vperm.xlu1 %136, %v193_v20  }
  0xa0   :  { %v88_v21 = vpop.permute.xlu0 %87 }
  0xa1   :  { %vm92_vm3 = vcmp.eq.s32.totalorder %v27_v3, %v88_v21 }
  0xa2   :  { %v94_v22 = vsel %vm92_vm3, %v22_v2, 0.0  ;;  %v112_v1 = vld [vmem:[#allocation2 + $0x8] sm:$0xff] }
  0xa3   :  { %v96_v23 = vsel %vm36_vm1, %v94_v22, 0.0 }
  0xa4   :  { %97 = vadd.xlane.f32.xlu0 %v96_v23 }
 0x116   :  { %v58_v24 = vpop.permute.xlu1 %57 }
 0x117   :  { %v65_v25 = vsub.f32 %v32_v5, %v58_v24 }
 0x119   :  { %v67_v26 = vmul.f32 1.442695, %v65_v25 }
 0x11a   :  { %v63_v27 = vpop.permute.xlu1 %62 }
 0x11b   :  { %138 = vpow2.f32 %v67_v26  ;;  %v66_v28 = vsub.f32 %v33_v6, %v63_v27 }
 0x11d   :  { %v69_v29 = vmul.f32 1.442695, %v66_v28 }
 0x11e   :  { %v91_v31 = vpop.permute.xlu1 %90 }
 0x11f   :  { %140 = vpow2.f32 %v69_v29  ;;  %vm93_vm4 = vcmp.eq.s32.totalorder %v27_v3, %v91_v31 }
 0x120   :  { %v95_v35 = vsel %vm93_vm4, %v23_v4, 0.0  ;;  %142 = vpow2.f32 %v47_v40 }
 0x121   :  { %v99_v36 = vsel %vm36_vm1, %v95_v35, 0.0  ;;  %144 = vpow2.f32 %v49_v41 }
 0x125   :  { %v139_v30 = vpop.eup %138 }
 0x126   :  { %v71_v32 = vsel %vm36_vm1, %v139_v30, 0.0 }
 0x127   :  { %72 = vadd.xlane.f32.xlu1 %v71_v32 }
 0x129   :  { %v141_v33 = vpop.eup %140 }
 0x12a   :  { %v74_v34 = vsel %vm36_vm1, %v141_v33, 0.0  ;;  %v143_v42 = vpop.eup %142 }
 0x12b   :  { %75 = vadd.xlane.f32.xlu1 %v74_v34  ;;  %v53_v44 = vmul.f32 %v143_v42, %v51_v43  ;;  %v145_v45 = vpop.eup %144 }
 0x12c   :  { %v54_v49 = vmul.f32 %v145_v45, %v52_v47 }
 0x12f   :  { %100 = vadd.xlane.f32.xlu1 %v99_v36 }
 0x131   :  { %v98_v38 = vpop.xlane.xlu0 %97 }
 0x132   :  { %v102_v39 = vadd.f32 %v98_v38, %v84_v37 }
 0x134   :  { %104 = vst.msk [vmem:[#allocation4] sm:$0xff] %vm15_vm0, %v102_v39 }
 0x13b   :  { %v121_v60 = vld [vmem:[#allocation4] sm:$0xff] }
 0x1b4   :  { %v73_v46 = vpop.xlane.xlu1 %72 }
 0x1b5   :  { %v77_v48 = vadd.f32 %v73_v46, %v53_v44 }
 0x1b7   :  { %80 = vst.msk [vmem:[#allocation3] sm:$0xff] %vm15_vm0, %v77_v48 }
 0x1b8   :  { %v76_v50 = vpop.xlane.xlu1 %75 }
 0x1b9   :  { %v78_v51 = vadd.f32 %v76_v50, %v54_v49 }
 0x1bb   :  { %81 = vst.msk [vmem:[#allocation3 + $0x8] sm:$0xff] %vm15_vm0, %v78_v51 }
 0x1bc   :  { %v101_v53 = vpop.xlane.xlu1 %100 }
 0x1bd   :  { %v103_v54 = vadd.f32 %v101_v53, %v85_v52 }
 0x1be   :  { %v113_v55 = vld [vmem:[#allocation3] sm:$0xff] }
 0x1bf   :  { %146 = vlog2.f32 %v113_v55  ;;  %105 = vst.msk [vmem:[#allocation4 + $0x8] sm:$0xff] %vm15_vm0, %v103_v54 }
 0x1c2   :  { %v114_v56 = vld [vmem:[#allocation3 + $0x8] sm:$0xff] }
 0x1c3   :  { %148 = vlog2.f32 %v114_v56 }
 0x1c6   :  { %v122_v4 = vld [vmem:[#allocation4 + $0x8] sm:$0xff] }
 0x1c9   :  { %v147_v57 = vpop.eup %146 }
 0x1ca   :  { %v116_v58 = vmul.f32 0.6931472, %v147_v57 }
 0x1cc   :  { %v119_v61 = vadd.f32 %v116_v58, %v111_v59 }
 0x1cd   :  { %v149_v62 = vpop.eup %148 }
 0x1ce   :  { %v118_v63 = vmul.f32 0.6931472, %v149_v62  ;;  %v123_v0 = vsub.f32 %v119_v61, %v121_v60 }
 0x1d0   :  { %v120_v2 = vadd.f32 %v118_v63, %v112_v1  ;;  %v125_v3 = vsel %vm109_vm5, %v123_v0, 0.0 }
 0x1d1   :  { %127 = vst.msk [vmem:[%s216_s2] sm:$0xff] %vm15_vm0, %v125_v3 }
 0x1d2   :  { %v124_v5 = vsub.f32 %v120_v2, %v122_v4 }
 0x1d4   :  { %v126_v6 = vsel %vm110_vm6, %v124_v5, 0.0 }
 0x1d5   :  { %128 = vst.msk [vmem:[%s216_s2 + $0x8] sm:$0xff] %vm15_vm0, %v126_v6 }

</bundles_post_ra>
